<compile_context>
chip_gen: v7x
topology: tpu7x:2x2x1
jax: 0.10.0
libtpu: 0.0.40
codegen_flags: <defaults>
</compile_context>

<pallas_src>
from typing import NamedTuple

import jax
import jax.numpy as jnp
from jax.experimental import pallas as pl
from jax.experimental.pallas import tpu as pltpu


def _round_up(x, m):
    return ((x + m - 1) // m) * m


def _choose_fold(n_output):
    """Smallest power-of-two fold F so F*n_output is a multiple of 128 lanes."""
    for f in (1, 2, 4, 8, 16, 32, 64, 128):
        if (f * n_output) % 128 == 0:
            return f
    return 8  # fallback: still fold 8 rows per folded output row


class FoldedReceiverParams(NamedTuple):
    w1_f: jax.Array   # [F*n_hidden, F*mid]     block-diagonal
    b1_f: jax.Array   # [1, F*mid]              f32
    w2_f: jax.Array   # [F*mid, F*n_output]     block-diagonal
    b2_f: jax.Array   # [1, F*n_output]         f32
    fold: int
    n_hidden: int
    mid: int
    n_output: int


def fold_receiver_params(w1, b1, w2, b2, *, mxu_dtype=None):
    """One-time prep (hoisted out of the forward hot path).

    w1: [n_hidden, mid], b1: [1, mid] or [mid], w2: [mid, n_output],
    b2: [1, n_output] or [n_output].  If mxu_dtype is jnp.bfloat16 the folded
    weights are stored pre-cast (halves weight VMEM + the one-time weight DMA
    and removes per-step repacking); biases stay f32 so bias-add/tanh run f32.
    """
    n_hidden, mid = w1.shape
    n_output = w2.shape[1]
    F = _choose_fold(n_output)

    eye = jnp.eye(F, dtype=jnp.float32)
    w1_f = jnp.kron(eye, w1.astype(jnp.float32))          # [F*n_hidden, F*mid]
    w2_f = jnp.kron(eye, w2.astype(jnp.float32))          # [F*mid, F*n_output]
    if mxu_dtype is not None:
        w1_f = w1_f.astype(mxu_dtype)
        w2_f = w2_f.astype(mxu_dtype)
    b1_f = jnp.tile(b1.reshape(1, -1).astype(jnp.float32), (1, F))
    b2_f = jnp.tile(b2.reshape(1, -1).astype(jnp.float32), (1, F))
    return FoldedReceiverParams(w1_f, b1_f, w2_f, b2_f, F, n_hidden, mid, n_output)


def _receiver_kernel(x_ref, w1_ref, b1_ref, w2_ref, b2_ref, o_ref):
    w1 = w1_ref[...]
    w2 = w2_ref[...]
    # MXU operand dtype follows the (pre-cast) weight dtype; f32 accumulation.
    x = x_ref[...].astype(w1.dtype)
    h = jnp.tanh(jnp.dot(x, w1, preferred_element_type=jnp.float32) + b1_ref[...])
    y = jnp.dot(h.astype(w2.dtype), w2,
                preferred_element_type=jnp.float32) + b2_ref[...]
    o_ref[...] = y.astype(o_ref.dtype)                     # lane-dense store


def receiver_forward(x, params: FoldedReceiverParams, *, block_rows=1024,
                     out_dtype=None, min_grid_steps=2):
    """x: [B, n_hidden]  ->  [B, n_output]."""
    B, n_hidden = x.shape
    assert n_hidden == params.n_hidden
    F = params.fold
    fh, fm, fo = F * n_hidden, F * params.mid, F * params.n_output
    out_dtype = jnp.dtype(out_dtype if out_dtype is not None else x.dtype)

    # Sublane granularity for the (tb, *) blocks: 16 for 2-byte I/O, else 8.
    sub = 16 if (jnp.dtype(x.dtype).itemsize < 4 or out_dtype.itemsize < 4) else 8

    # Pad only to the sublane multiple (NOT to a tile multiple).
    R = -(-B // F)                                         # folded rows needed
    R_pad = _round_up(R, sub)
    B_pad = R_pad * F
    if B_pad != B:
        x = jnp.pad(x, ((0, B_pad - B), (0, 0)))
    x_f = x.reshape(R_pad, fh)                             # free layout reinterpret

    # Tile size: large to amortize ~0.35us/step, capped so the grid has
    # >= min_grid_steps steps (lets v7x's two TCs split the batch).
    tb = _round_up(min(max(block_rows, sub), R_pad), sub)
    if R_pad >= min_grid_steps * sub:
        tb = min(tb, _round_up(-(-R_pad // min_grid_steps), sub))
    grid = (pl.cdiv(R_pad, tb),)                           # tail block edge-masked

    cost = pl.CostEstimate(                                # useful (un-inflated) work
        flops=int(2 * B * (n_hidden * params.mid + params.mid * params.n_output)),
        transcendentals=int(B * params.mid),
        bytes_accessed=int(
            x_f.size * x_f.dtype.itemsize
            + params.w1_f.size * params.w1_f.dtype.itemsize
            + params.b1_f.size * params.b1_f.dtype.itemsize
            + params.w2_f.size * params.w2_f.dtype.itemsize
            + params.b2_f.size * params.b2_f.dtype.itemsize
            + R_pad * fo * out_dtype.itemsize),
    )

    def run(single_buffer_weights):
        if single_buffer_weights:
            # Constant block index -> one VMEM buffer is enough; frees headroom.
            const = lambda shape: pl.BlockSpec(shape, lambda i: (0, 0),
                                               pipeline_mode=pl.Buffered(1))
        else:
            const = lambda shape: pl.BlockSpec(shape, lambda i: (0, 0))
        return pl.pallas_call(
            _receiver_kernel,
            out_shape=jax.ShapeDtypeStruct((R_pad, fo), out_dtype),
            grid=grid,
            in_specs=[
                pl.BlockSpec((tb, fh), lambda i: (i, 0)),  # x tile per grid step
                const((fh, fm)),                           # W1 (block-diagonal, resident)
                const((1, fm)),                            # b1 (tiled, f32)
                const((fm, fo)),                           # W2 (block-diagonal, resident)
                const((1, fo)),                            # b2 (tiled, f32)
            ],
            out_specs=pl.BlockSpec((tb, fo), lambda i: (i, 0)),
            compiler_params=pltpu.CompilerParams(
                dimension_semantics=("parallel",)),        # megacore split on v7x
            cost_estimate=cost,
        )(x_f, params.w1_f, params.b1_f, params.w2_f, params.b2_f)

    try:
        y_f = run(single_buffer_weights=True)
    except Exception:
        # Fallback for jax versions that reject pl.Buffered(1) on constant specs.
        y_f = run(single_buffer_weights=False)

    return y_f.reshape(B_pad, params.n_output)[:B]


def init_params(key, n_hidden, n_output, dtype=jnp.float32):
    """Synthetic init matching nn.Linear shapes (PyTorch-default uniform)."""
    mid = (n_hidden + n_output) // 2
    k1, k2, k3, k4 = jax.random.split(key, 4)
    lim1 = 1.0 / jnp.sqrt(n_hidden)
    lim2 = 1.0 / jnp.sqrt(mid)
    # Stored as [in, out] (transpose of torch's [out, in]).
    w1 = jax.random.uniform(k1, (n_hidden, mid), dtype, -lim1, lim1)
    b1 = jax.random.uniform(k2, (1, mid), dtype, -lim1, lim1)
    w2 = jax.random.uniform(k3, (mid, n_output), dtype, -lim2, lim2)
    b2 = jax.random.uniform(k4, (1, n_output), dtype, -lim2, lim2)
    return w1, b1, w2, b2


if __name__ == "__main__":
    key = jax.random.PRNGKey(0)
    n_hidden, n_output = 32, 16          # mid = (32 + 16) // 2 = 24, as in the module
    B = 256                              # small demo batch
    kx, kp = jax.random.split(key)

    x = jax.random.normal(kx, (B, n_hidden), jnp.float32)
    w1, b1, w2, b2 = init_params(kp, n_hidden, n_output)
    ref = jnp.tanh(x @ w1 + b1) @ w2 + b2   # pure-JAX reference

    # --- f32 path; tiny tile so the demo exercises a multi-step grid --------
    params_f32 = fold_receiver_params(w1, b1, w2, b2)
    out = jax.block_until_ready(receiver_forward(x, params_f32, block_rows=16))
    assert out.shape == (B, n_output)
    assert jnp.allclose(out, ref, atol=1e-5, rtol=1e-5)

    # --- bandwidth-optimized path: bf16 x + pre-cast bf16 weights (f32 acc) --
    params_bf16 = fold_receiver_params(w1, b1, w2, b2, mxu_dtype=jnp.bfloat16)
    out_bf = jax.block_until_ready(
        receiver_forward(x.astype(jnp.bfloat16), params_bf16,
                         block_rows=1024, out_dtype=jnp.float32))
    assert out_bf.shape == (B, n_output)
    assert jnp.allclose(out_bf, ref, atol=2e-2, rtol=2e-2)

    print("KERNEL_OK")
</pallas_src>

<mosaic_0001>
module attributes {stable_mosaic.version = 11 : i64} {
  func.func @_receiver_kernel(%arg0: i32, %arg1: memref<16x256xf32, #tpu.memory_space<vmem>>, %arg2: memref<256x192xf32, #tpu.memory_space<vmem>>, %arg3: memref<1x192xf32, #tpu.memory_space<vmem>>, %arg4: memref<192x128xf32, #tpu.memory_space<vmem>>, %arg5: memref<1x128xf32, #tpu.memory_space<vmem>>, %arg6: memref<16x128xf32, #tpu.memory_space<vmem>>) attributes {dimension_semantics = [#tpu.dimension_semantics<parallel>], iteration_bounds = array<i64: 2>, scalar_prefetch = 0 : i64, scratch_operands = 0 : i64, tpu.core_type = #tpu.core_type<tc>, window_params = [{transform_indices = @transform_0, window_bounds = array<i64: 16, 256>}, {pipeline_mode = #tpu.pipeline_mode<synchronous>, transform_indices = @transform_1, window_bounds = array<i64: 256, 192>}, {pipeline_mode = #tpu.pipeline_mode<synchronous>, transform_indices = @transform_2, window_bounds = array<i64: 1, 192>}, {pipeline_mode = #tpu.pipeline_mode<synchronous>, transform_indices = @transform_3, window_bounds = array<i64: 192, 128>}, {pipeline_mode = #tpu.pipeline_mode<synchronous>, transform_indices = @transform_4, window_bounds = array<i64: 1, 128>}, {transform_indices = @transform_5, window_bounds = array<i64: 16, 128>}]} {
    %c0 = arith.constant 0 : index
    %c0_0 = arith.constant 0 : index
    %0 = vector.load %arg2[%c0, %c0_0] : memref<256x192xf32, #tpu.memory_space<vmem>>, vector<256x192xf32>
    %c0_1 = arith.constant 0 : index
    %c0_2 = arith.constant 0 : index
    %1 = vector.load %arg4[%c0_1, %c0_2] : memref<192x128xf32, #tpu.memory_space<vmem>>, vector<192x128xf32>
    %c0_3 = arith.constant 0 : index
    %c0_4 = arith.constant 0 : index
    %2 = vector.load %arg1[%c0_3, %c0_4] : memref<16x256xf32, #tpu.memory_space<vmem>>, vector<16x256xf32>
    %cst = arith.constant dense<0.000000e+00> : vector<16x192xf32>
    %3 = tpu.matmul %2, %0, %cst {dimension_numbers = #tpu.dot_dimension_numbers<[1], [0], [0], [1], [0, 0, 1, 1], [], []>} : vector<16x256xf32>, vector<256x192xf32>, vector<16x192xf32> -> vector<16x192xf32>
    %c0_5 = arith.constant 0 : index
    %c0_6 = arith.constant 0 : index
    %4 = vector.load %arg3[%c0_5, %c0_6] : memref<1x192xf32, #tpu.memory_space<vmem>>, vector<1x192xf32>
    %5 = vector.broadcast %4 : vector<1x192xf32> to vector<16x192xf32>
    %6 = arith.addf %3, %5 : vector<16x192xf32>
    %7 = math.tanh %6 : vector<16x192xf32>
    %cst_7 = arith.constant dense<0.000000e+00> : vector<16x128xf32>
    %8 = tpu.matmul %7, %1, %cst_7 {dimension_numbers = #tpu.dot_dimension_numbers<[1], [0], [0], [1], [0, 0, 1, 1], [], []>} : vector<16x192xf32>, vector<192x128xf32>, vector<16x128xf32> -> vector<16x128xf32>
    %c0_8 = arith.constant 0 : index
    %c0_9 = arith.constant 0 : index
    %9 = vector.load %arg5[%c0_8, %c0_9] : memref<1x128xf32, #tpu.memory_space<vmem>>, vector<1x128xf32>
    %10 = vector.broadcast %9 : vector<1x128xf32> to vector<16x128xf32>
    %11 = arith.addf %8, %10 : vector<16x128xf32>
    %c0_10 = arith.constant 0 : index
    %c0_11 = arith.constant 0 : index
    %12 = vector.load %arg6[%c0_10, %c0_11] : memref<16x128xf32, #tpu.memory_space<vmem>>, vector<16x128xf32>
    tpu.vector_store %arg6[%c0_10, %c0_11], %11 {strides = array<i32>} : memref<16x128xf32, #tpu.memory_space<vmem>>, vector<16x128xf32>,
    return
  }
  func.func @transform_0(%arg0: i32) -> (i32, i32) {
    %c0_i32 = arith.constant 0 : i32
    %c0_i32_0 = arith.constant 0 : i32
    return %arg0, %c0_i32 : i32, i32
  }
  func.func @transform_1(%arg0: i32) -> (i32, i32) {
    %c0_i32 = arith.constant 0 : i32
    %c0_i32_0 = arith.constant 0 : i32
    %c0_i32_1 = arith.constant 0 : i32
    return %c0_i32, %c0_i32_0 : i32, i32
  }
  func.func @transform_2(%arg0: i32) -> (i32, i32) {
    %c0_i32 = arith.constant 0 : i32
    %c0_i32_0 = arith.constant 0 : i32
    %c0_i32_1 = arith.constant 0 : i32
    return %c0_i32, %c0_i32_0 : i32, i32
  }
  func.func @transform_3(%arg0: i32) -> (i32, i32) {
    %c0_i32 = arith.constant 0 : i32
    %c0_i32_0 = arith.constant 0 : i32
    %c0_i32_1 = arith.constant 0 : i32
    return %c0_i32, %c0_i32_0 : i32, i32
  }
  func.func @transform_4(%arg0: i32) -> (i32, i32) {
    %c0_i32 = arith.constant 0 : i32
    %c0_i32_0 = arith.constant 0 : i32
    %c0_i32_1 = arith.constant 0 : i32
    return %c0_i32, %c0_i32_0 : i32, i32
  }
  func.func @transform_5(%arg0: i32) -> (i32, i32) {
    %c0_i32 = arith.constant 0 : i32
    %c0_i32_0 = arith.constant 0 : i32
    return %arg0, %c0_i32 : i32, i32
  }
}

module attributes {stable_mosaic.version = 11 : i64} {
  func.func @_receiver_kernel(%arg0: i32, %arg1: memref<16x256xf32, #tpu.memory_space<vmem>>, %arg2: memref<256x192xf32, #tpu.memory_space<vmem>>, %arg3: memref<1x192xf32, #tpu.memory_space<vmem>>, %arg4: memref<192x128xf32, #tpu.memory_space<vmem>>, %arg5: memref<1x128xf32, #tpu.memory_space<vmem>>, %arg6: memref<16x128xf32, #tpu.memory_space<vmem>>) attributes {dimension_semantics = [#tpu.dimension_semantics<parallel>], iteration_bounds = array<i64: 2>, scalar_prefetch = 0 : i64, scratch_operands = 0 : i64, tpu.core_type = #tpu.core_type<tc>, window_params = [{transform_indices = @transform_0, window_bounds = array<i64: 16, 256>}, {pipeline_mode = #tpu.pipeline_mode<synchronous>, transform_indices = @transform_1, window_bounds = array<i64: 256, 192>}, {pipeline_mode = #tpu.pipeline_mode<synchronous>, transform_indices = @transform_2, window_bounds = array<i64: 1, 192>}, {pipeline_mode = #tpu.pipeline_mode<synchronous>, transform_indices = @transform_3, window_bounds = array<i64: 192, 128>}, {pipeline_mode = #tpu.pipeline_mode<synchronous>, transform_indices = @transform_4, window_bounds = array<i64: 1, 128>}, {transform_indices = @transform_5, window_bounds = array<i64: 16, 128>}]} {
    %c0 = arith.constant 0 : index
    %c0_0 = arith.constant 0 : index
    %0 = vector.load %arg2[%c0, %c0_0] : memref<256x192xf32, #tpu.memory_space<vmem>>, vector<256x192xf32>
    %c0_1 = arith.constant 0 : index
    %c0_2 = arith.constant 0 : index
    %1 = vector.load %arg4[%c0_1, %c0_2] : memref<192x128xf32, #tpu.memory_space<vmem>>, vector<192x128xf32>
    %c0_3 = arith.constant 0 : index
    %c0_4 = arith.constant 0 : index
    %2 = vector.load %arg1[%c0_3, %c0_4] : memref<16x256xf32, #tpu.memory_space<vmem>>, vector<16x256xf32>
    %cst = arith.constant dense<0.000000e+00> : vector<16x192xf32>
    %3 = tpu.matmul %2, %0, %cst {dimension_numbers = #tpu.dot_dimension_numbers<[1], [0], [0], [1], [0, 0, 1, 1], [], []>} : vector<16x256xf32>, vector<256x192xf32>, vector<16x192xf32> -> vector<16x192xf32>
    %c0_5 = arith.constant 0 : index
    %c0_6 = arith.constant 0 : index
    %4 = vector.load %arg3[%c0_5, %c0_6] : memref<1x192xf32, #tpu.memory_space<vmem>>, vector<1x192xf32>
    %5 = vector.broadcast %4 : vector<1x192xf32> to vector<16x192xf32>
    %6 = arith.addf %3, %5 : vector<16x192xf32>
    %7 = math.tanh %6 : vector<16x192xf32>
    %cst_7 = arith.constant dense<0.000000e+00> : vector<16x128xf32>
    %8 = tpu.matmul %7, %1, %cst_7 {dimension_numbers = #tpu.dot_dimension_numbers<[1], [0], [0], [1], [0, 0, 1, 1], [], []>} : vector<16x192xf32>, vector<192x128xf32>, vector<16x128xf32> -> vector<16x128xf32>
    %c0_8 = arith.constant 0 : index
    %c0_9 = arith.constant 0 : index
    %9 = vector.load %arg5[%c0_8, %c0_9] : memref<1x128xf32, #tpu.memory_space<vmem>>, vector<1x128xf32>
    %10 = vector.broadcast %9 : vector<1x128xf32> to vector<16x128xf32>
    %11 = arith.addf %8, %10 : vector<16x128xf32>
    %c0_10 = arith.constant 0 : index
    %c0_11 = arith.constant 0 : index
    %12 = vector.load %arg6[%c0_10, %c0_11] : memref<16x128xf32, #tpu.memory_space<vmem>>, vector<16x128xf32>
    tpu.vector_store %arg6[%c0_10, %c0_11], %11 {strides = array<i32>} : memref<16x128xf32, #tpu.memory_space<vmem>>, vector<16x128xf32>,
    return
  }
  func.func @transform_0(%arg0: i32) -> (i32, i32) {
    %c0_i32 = arith.constant 0 : i32
    %c0_i32_0 = arith.constant 0 : i32
    return %arg0, %c0_i32 : i32, i32
  }
  func.func @transform_1(%arg0: i32) -> (i32, i32) {
    %c0_i32 = arith.constant 0 : i32
    %c0_i32_0 = arith.constant 0 : i32
    %c0_i32_1 = arith.constant 0 : i32
    return %c0_i32, %c0_i32_0 : i32, i32
  }
  func.func @transform_2(%arg0: i32) -> (i32, i32) {
    %c0_i32 = arith.constant 0 : i32
    %c0_i32_0 = arith.constant 0 : i32
    %c0_i32_1 = arith.constant 0 : i32
    return %c0_i32, %c0_i32_0 : i32, i32
  }
  func.func @transform_3(%arg0: i32) -> (i32, i32) {
    %c0_i32 = arith.constant 0 : i32
    %c0_i32_0 = arith.constant 0 : i32
    %c0_i32_1 = arith.constant 0 : i32
    return %c0_i32, %c0_i32_0 : i32, i32
  }
  func.func @transform_4(%arg0: i32) -> (i32, i32) {
    %c0_i32 = arith.constant 0 : i32
    %c0_i32_0 = arith.constant 0 : i32
    %c0_i32_1 = arith.constant 0 : i32
    return %c0_i32, %c0_i32_0 : i32, i32
  }
  func.func @transform_5(%arg0: i32) -> (i32, i32) {
    %c0_i32 = arith.constant 0 : i32
    %c0_i32_0 = arith.constant 0 : i32
    return %arg0, %c0_i32 : i32, i32
  }
}

</mosaic_0001>

<bundles_post_ra>
// kernel: tpu_custom_call.1
= control target key start
LH: loop header
LB: loop body
LE: loop exit
PB: predicated region body
PF: predicated region fallthrough
CT: control target
= control target key end

     0   :  { %10 = vsyncpa [#allocation3], 0  ;;  %s1237_s0 = inlined_call_operand.vmem [shape: f32[32,256], index: 0, kind: input, shape index: {}]   ;;  %s1238_s1 = inlined_call_operand.vmem [shape: f32[256,192], index: 1, kind: input, shape index: {}]   ;;  %s1239_s2 = inlined_call_operand.vmem [shape: f32[1,192], index: 2, kind: input, shape index: {}]   ;;  %s1240_s3 = inlined_call_operand.vmem [shape: f32[192,128], index: 3, kind: input, shape index: {}]   ;;  %s1241_s4 = inlined_call_operand.vmem [shape: f32[1,128], index: 4, kind: input, shape index: {}]   ;;  %s1242_s5 = inlined_call_operand.hbm [shape: f32[32,128], index: 5, kind: output, shape index: {}]  }
   0x1   :  { %12 = vsyncpa [#allocation3 + $0x1], 0  ;;  %s847_s18 = smov 0   ;;  %s849_s19 = smov 0  }
   0x2   :  { %s851_s20 = smov 0   ;;  %s853_s21 = smov 0  }
   0x3 LB: > { %s868_s22 = sadd.s32 4294967295, %s811_s21   ;;  %s581_s23 = sadd.s32 4294967294, %s811_s21   ;;  %s811_s21 = sphi %s853_s21, %s1248_s21   ;;  %s807_s20 = sphi %s851_s20, %s1247_s20   ;;  %s803_s19 = sphi %s849_s19, %s1246_s19   ;;  %s799_s18 = sphi %s847_s18, %s1245_s18  }
   0x4   : > { %s872_s24 = sadd.s32 1, %s811_s21   ;;  %s135_s25 = sadd.s32 1, %s807_s20 }
   0x5   : > { %s132_s26 = ssub.s32 %s811_s21, %s872_s24  ;;  %p145_p0 = scmp.ne.s32.totalorder %s807_s20, %s803_s19 }
   0x6   : > { %p133_p1 = scmp.eq.s32.totalorder %s132_s26, 0  ;;  %p146_p2 = scmp.eq.s32.totalorder %s868_s22, 1 }
   0x7   : > { %p151_p3 = scmp.ne.s32.totalorder %s803_s19, %s799_s18  ;;  %p152_p4 = scmp.eq.s32.totalorder %s581_s23, 1 }
   0x8   : > { %s883_s27 = scalar_select %p133_p1, %s807_s20, %s135_s25  }
   0x9   : > { %p885_p5 = por %p146_p2, %p145_p0  ;;  %p889_p6 = por %p152_p4, %p151_p3 }
   0xa   : > { %p584_p7 = scmp.ge.s32.totalorder %s811_s21, 1  ;;  %p192_p8 = scmp.lt.s32.totalorder %s811_s21, 3 }
   0xc   : > { %p193_p9 = pnand %p584_p7, %p192_p8 }
   0xd   : > { %v230_v0 = vld [vmem:[%s1238_s1 + $0x8] sm:$0xff] (!%p193_p9)  ;;  %v232_v1 = vld [vmem:[%s1238_s1 + $0x18] sm:$0xff] (!%p193_p9)  ;;  %v229_v2 = vld [vmem:[%s1238_s1] sm:$0xff] (!%p193_p9)  ;;  %v813_v7 = vmov (!%p193_p9), 0.0|0.0   ;;  %s586_s9 = sshll.u32 (!%p193_p9), %s868_s22, 1  ;;  %vm421_vm0 = vcmask (!%p193_p9), 523264  }
   0xe   : > { %196 = sbr.rel (%p193_p9) target bundleno = 540 (0x21c), region = 40  ;;  %v599_v3 = vpack.c.bf16 (!%p193_p9), %v232_v1, %v230_v0  ;;  %v231_v4 = vld [vmem:[%s1238_s1 + $0x10] sm:$0xff] (!%p193_p9)  ;;  %v234_v5 = vld [vmem:[%s1238_s1 + $0x28] sm:$0xff] (!%p193_p9)  ;;  %v236_v6 = vld [vmem:[%s1238_s1 + $0x38] sm:$0xff] (!%p193_p9)  ;;  %663 = vmatprep.subr.bf16.mxu1 (!%p193_p9), %v813_v7  ;;  %p222_p10 = scmp.lt.s32.totalorder (!%p193_p9), %s586_s9, 3 }
   0xf   : > { %v601_v8 = vpack.c.bf16 (!%p193_p9), %v231_v4, %v229_v2  ;;  %v603_v9 = vpack.c.bf16 (!%p193_p9), %v236_v6, %v234_v5  ;;  %v233_v10 = vld [vmem:[%s1238_s1 + $0x20] sm:$0xff] (!%p193_p9)  ;;  %v235_v11 = vld [vmem:[%s1238_s1 + $0x30] sm:$0xff] (!%p193_p9)  ;;  %v238_v12 = vld [vmem:[%s1238_s1 + $0x48] sm:$0xff] (!%p193_p9)  ;;  %s218_s30 = sand.u32 (!%p193_p9), 1, %s803_s19  }
  0x10   : > { %600 = vmatprep.subr.bf16.mxu0 (!%p193_p9), %v599_v3  ;;  %v240_v13 = vld [vmem:[%s1238_s1 + $0x58] sm:$0xff] (!%p193_p9)  ;;  %v605_v14 = vpack.c.bf16 (!%p193_p9), %v235_v11, %v233_v10  ;;  %v237_v16 = vld [vmem:[%s1238_s1 + $0x40] sm:$0xff] (!%p193_p9)  ;;  %v239_v17 = vld [vmem:[%s1238_s1 + $0x50] sm:$0xff] (!%p193_p9)  ;;  %s1196_s13 = scalar_lea.sflag (!%p193_p9), [#allocation3], %s218_s30 }
  0x11   : > { %602 = vmatpush1.bf16.msra.mxu0 (!%p193_p9), %v601_v8  ;;  %v607_v15 = vpack.c.bf16 (!%p193_p9), %v240_v13, %v238_v12  ;;  %v242_v18 = vld [vmem:[%s1238_s1 + $0x68] sm:$0xff] (!%p193_p9)  ;;  %v244_v19 = vld [vmem:[%s1238_s1 + $0x78] sm:$0xff] (!%p193_p9)  ;;  %v609_v20 = vpack.c.bf16 (!%p193_p9), %v239_v17, %v237_v16  ;;  %v241_v22 = vld [vmem:[%s1238_s1 + $0x60] sm:$0xff] (!%p193_p9) }
  0x12   : > { %604 = vmatprep.subr.bf16.mxu0 (!%p193_p9), %v603_v9  ;;  %v611_v21 = vpack.c.bf16 (!%p193_p9), %v244_v19, %v242_v18  ;;  %v243_v23 = vld [vmem:[%s1238_s1 + $0x70] sm:$0xff] (!%p193_p9)  ;;  %v246_v24 = vld [vmem:[%s1238_s1 + $0x88] sm:$0xff] (!%p193_p9)  ;;  %v248_v25 = vld [vmem:[%s1238_s1 + $0x98] sm:$0xff] (!%p193_p9) }
  0x13   : > { %v613_v26 = vpack.c.bf16 (!%p193_p9), %v243_v23, %v241_v22  ;;  %v615_v27 = vpack.c.bf16 (!%p193_p9), %v248_v25, %v246_v24  ;;  %v245_v28 = vld [vmem:[%s1238_s1 + $0x80] sm:$0xff] (!%p193_p9)  ;;  %v247_v29 = vld [vmem:[%s1238_s1 + $0x90] sm:$0xff] (!%p193_p9)  ;;  %v250_v30 = vld [vmem:[%s1238_s1 + $0xa8] sm:$0xff] (!%p193_p9) }
  0x14   : > { %v252_v31 = vld [vmem:[%s1238_s1 + $0xb8] sm:$0xff] (!%p193_p9)  ;;  %v617_v32 = vpack.c.bf16 (!%p193_p9), %v247_v29, %v245_v28  ;;  %v249_v34 = vld [vmem:[%s1238_s1 + $0xa0] sm:$0xff] (!%p193_p9)  ;;  %v251_v35 = vld [vmem:[%s1238_s1 + $0xb0] sm:$0xff] (!%p193_p9) }
  0x15   : > { %606 = vmatpush1.bf16.msra.mxu0 %v605_v14  ;;  %s1250_s9 = smov (!%p222_p10, %s586_s9), 3  ;;  %v619_v33 = vpack.c.bf16 %v252_v31, %v250_v30  ;;  %v254_v36 = vld [vmem:[%s1238_s1 + $0xc8] sm:$0xff]  ;;  %v256_v37 = vld [vmem:[%s1238_s1 + $0xd8] sm:$0xff]  ;;  %v621_v38 = vpack.c.bf16 %v251_v35, %v249_v34  ;;  %v253_v40 = vld [vmem:[%s1238_s1 + $0xc0] sm:$0xff] }
  0x16   : > { %608 = vmatprep.subr.bf16.mxu0 %v607_v15  ;;  %s597_s25 = sshll.u32 %s1250_s9, 4  ;;  %v623_v39 = vpack.c.bf16 %v256_v37, %v254_v36  ;;  %v255_v41 = vld [vmem:[%s1238_s1 + $0xd0] sm:$0xff]  ;;  %v258_v43 = vld [vmem:[%s1238_s1 + $0xe8] sm:$0xff]  ;;  %v260_v44 = vld [vmem:[%s1238_s1 + $0xf8] sm:$0xff] }
  0x17   : > { %s978_s14 = scalar_lea.vmem %s1237_s0, %s597_s25  ;;  %v293_v45 = vld [vmem:[%s1240_s3] sm:$0xff]  ;;  %v294_v46 = vld [vmem:[%s1240_s3 + $0x8] sm:$0xff]  ;;  %v295_v47 = vld [vmem:[%s1240_s3 + $0x10] sm:$0xff]  ;;  %v625_v49 = vpack.c.bf16 %v255_v41, %v253_v40  ;;  %v627_v51 = vpack.c.bf16 %v260_v44, %v258_v43  ;;  %s585_s25 = sshll.u32 %s218_s30, 4 }
  0x18   : > { %v318_v42 = vld [vmem:[%s978_s14 + $0x8] sm:$0xff]  ;;  %v296_v48 = vld [vmem:[%s1240_s3 + $0x18] sm:$0xff]  ;;  %v664_v50 = vpack.c.bf16 %v294_v46, %v293_v45  ;;  %v257_v52 = vld [vmem:[%s1238_s1 + $0xe0] sm:$0xff]  ;;  %s220_s8 = scalar_lea.vmem [#allocation2], %s585_s25 }
  0x19   : > { %610 = vmatpush1.bf16.msra.mxu0 %v609_v20  ;;  %397 = vmatprep.mubr.f32.mxu0 %v318_v42  ;;  %v259_v53 = vld [vmem:[%s1238_s1 + $0xf0] sm:$0xff]  ;;  %v262_v54 = vld [vmem:[%s1238_s1 + $0x108] sm:$0xff]  ;;  %v264_v55 = vld [vmem:[%s1238_s1 + $0x118] sm:$0xff]  ;;  %v667_v56 = vpack.c.bf16 %v296_v48, %v295_v47  ;;  %s519_s10 = sshll.u32 %s220_s8, 4  ;;  %s1189_s10 = int_to_ptr.vmem [resolvable:$true] %s519_s10 }
  0x1a   : > { %612 = vmatprep.subr.bf16.mxu0 %v611_v21  ;;  %665 = vmatpush1.bf16.msra.mxu1 %v664_v50  ;;  %v297_v57 = vld [vmem:[%s1240_s3 + $0x20] sm:$0xff]  ;;  %v298_v58 = vld [vmem:[%s1240_s3 + $0x28] sm:$0xff]  ;;  %v629_v59 = vpack.c.bf16 %v259_v53, %v257_v52  ;;  %v631_v60 = vpack.c.bf16 %v264_v55, %v262_v54  ;;  %v263_v62 = vld [vmem:[%s1238_s1 + $0x110] sm:$0xff]  ;;  %s749_s15 = scalar_lea.vmem %s1189_s10, 256 }
  0x1b   : > { %666 = vmatprep.subr.bf16.mxu1 %v813_v7  ;;  %v261_v61 = vld [vmem:[%s1238_s1 + $0x100] sm:$0xff]  ;;  %v266_v63 = vld [vmem:[%s1238_s1 + $0x128] sm:$0xff]  ;;  %v268_v0 = vld [vmem:[%s1238_s1 + $0x138] sm:$0xff]  ;;  %v670_v1 = vpack.c.bf16 %v298_v58, %v297_v57  ;;  %p750_p11 = scmp.ne.s32.totalorder %s1189_s10, %s749_s15 }
  0x1c   : > { %v299_v2 = vld [vmem:[%s1240_s3 + $0x30] sm:$0xff]  ;;  %v300_v3 = vld [vmem:[%s1240_s3 + $0x38] sm:$0xff]  ;;  %v633_v4 = vpack.c.bf16 %v263_v62, %v261_v61  ;;  %v635_v5 = vpack.c.bf16 %v268_v0, %v266_v63  ;;  %v265_v6 = vld [vmem:[%s1238_s1 + $0x120] sm:$0xff] }
  0x1d   : > { %614 = vmatpush1.bf16.msra.mxu0 %v613_v26  ;;  %v267_v8 = vld [vmem:[%s1238_s1 + $0x130] sm:$0xff]  ;;  %v270_v9 = vld [vmem:[%s1238_s1 + $0x148] sm:$0xff]  ;;  %v272_v10 = vld [vmem:[%s1238_s1 + $0x158] sm:$0xff]  ;;  %v673_v11 = vpack.c.bf16 %v300_v3, %v299_v2  ;;  %p751_p12 = pnand %p750_p11, %p885_p5 }
  0x1e   : > { %616 = vmatprep.subr.bf16.mxu0 %v615_v27  ;;  %668 = vmatpush1.bf16.msra.mxu1 %v667_v56  ;;  %v301_v12 = vld [vmem:[%s1240_s3 + $0x40] sm:$0xff]  ;;  %v302_v13 = vld [vmem:[%s1240_s3 + $0x48] sm:$0xff]  ;;  %v637_v14 = vpack.c.bf16 %v267_v8, %v265_v6  ;;  %v639_v15 = vpack.c.bf16 %v272_v10, %v270_v9  ;;  %v271_v17 = vld [vmem:[%s1238_s1 + $0x150] sm:$0xff] }
  0x1f   : > { %669 = vmatprep.subr.bf16.mxu1 %v813_v7  ;;  %v269_v16 = vld [vmem:[%s1238_s1 + $0x140] sm:$0xff]  ;;  %v274_v18 = vld [vmem:[%s1238_s1 + $0x168] sm:$0xff]  ;;  %v276_v19 = vld [vmem:[%s1238_s1 + $0x178] sm:$0xff]  ;;  %v676_v20 = vpack.c.bf16 %v302_v13, %v301_v12  ;;  %p752_p13 = pneg %p751_p12 }
  0x20   : > { %v303_v21 = vld [vmem:[%s1240_s3 + $0x50] sm:$0xff]  ;;  %v304_v22 = vld [vmem:[%s1240_s3 + $0x58] sm:$0xff]  ;;  %v641_v23 = vpack.c.bf16 %v271_v17, %v269_v16  ;;  %v643_v24 = vpack.c.bf16 %v276_v19, %v274_v18  ;;  %v273_v25 = vld [vmem:[%s1238_s1 + $0x160] sm:$0xff] }
  0x21   : > { %618 = vmatpush1.bf16.msra.mxu0 %v617_v32  ;;  %v275_v26 = vld [vmem:[%s1238_s1 + $0x170] sm:$0xff]  ;;  %v278_v27 = vld [vmem:[%s1238_s1 + $0x188] sm:$0xff]  ;;  %v280_v28 = vld [vmem:[%s1238_s1 + $0x198] sm:$0xff]  ;;  %v679_v29 = vpack.c.bf16 %v304_v22, %v303_v21 }
  0x22   : > { %620 = vmatprep.subr.bf16.mxu0 %v619_v33  ;;  %671 = vmatpush1.bf16.msra.mxu1 %v670_v1  ;;  %v305_v30 = vld [vmem:[%s1240_s3 + $0x60] sm:$0xff]  ;;  %v306_v31 = vld [vmem:[%s1240_s3 + $0x68] sm:$0xff]  ;;  %v645_v32 = vpack.c.bf16 %v275_v26, %v273_v25  ;;  %v647_v33 = vpack.c.bf16 %v280_v28, %v278_v27  ;;  %v279_v35 = vld [vmem:[%s1238_s1 + $0x190] sm:$0xff] }
  0x23   : > { %672 = vmatprep.subr.bf16.mxu1 %v813_v7  ;;  %v277_v34 = vld [vmem:[%s1238_s1 + $0x180] sm:$0xff]  ;;  %v282_v36 = vld [vmem:[%s1238_s1 + $0x1a8] sm:$0xff]  ;;  %v284_v37 = vld [vmem:[%s1238_s1 + $0x1b8] sm:$0xff] }
  0x24   : > { %v308_v40 = vld [vmem:[%s1240_s3 + $0x78] sm:$0xff]  ;;  %v649_v41 = vpack.c.bf16 %v279_v35, %v277_v34  ;;  %v651_v42 = vpack.c.bf16 %v284_v37, %v282_v36  ;;  %v281_v43 = vld [vmem:[%s1238_s1 + $0x1a0] sm:$0xff]  ;;  %v283_v44 = vld [vmem:[%s1238_s1 + $0x1b0] sm:$0xff] }
  0x25   : > { %622 = vmatpush1.bf16.msra.mxu0 %v621_v38  ;;  %v682_v38 = vpack.c.bf16 %v306_v31, %v305_v30  ;;  %v286_v45 = vld [vmem:[%s1238_s1 + $0x1c8] sm:$0xff]  ;;  %v288_v46 = vld [vmem:[%s1238_s1 + $0x1d8] sm:$0xff]  ;;  %v653_v48 = vpack.c.bf16 %v283_v44, %v281_v43  ;;  %v285_v50 = vld [vmem:[%s1238_s1 + $0x1c0] sm:$0xff] }
  0x26   : > { %624 = vmatprep.subr.bf16.mxu0 %v623_v39  ;;  %674 = vmatpush1.bf16.msra.mxu1 %v673_v11  ;;  %v307_v39 = vld [vmem:[%s1240_s3 + $0x70] sm:$0xff]  ;;  %v290_v52 = vld [vmem:[%s1238_s1 + $0x1e8] sm:$0xff]  ;;  %v292_v53 = vld [vmem:[%s1238_s1 + $0x1f8] sm:$0xff]  ;;  %v323_v11 = vlaneseq }
  0x27   : > { %675 = vmatprep.subr.bf16.mxu1 %v813_v7  ;;  %v685_v47 = vpack.c.bf16 %v308_v40, %v307_v39  ;;  %v659_v55 = vpack.c.bf16 %v292_v53, %v290_v52  ;;  %v289_v56 = vld [vmem:[%s1238_s1 + $0x1e0] sm:$0xff]  ;;  %v291_v57 = vld [vmem:[%s1238_s1 + $0x1f0] sm:$0xff]  ;;  %v310_v63 = vld [vmem:[%s1240_s3 + $0x88] sm:$0xff] }
  0x28   : > { %v661_v58 = vpack.c.bf16 %v291_v57, %v289_v56  ;;  %v319_v61 = vld [vmem:[%s978_s14 + $0x10] sm:$0xff]  ;;  %v309_v62 = vld [vmem:[%s1240_s3 + $0x80] sm:$0xff]  ;;  %v312_v2 = vld [vmem:[%s1240_s3 + $0x98] sm:$0xff]  ;;  %v324_v12 = vshrl.u32 %v323_v11, 7 }
  0x29   : > { %626 = vmatpush1.bf16.msra.mxu0 %v625_v49  ;;  %v655_v49 = vpack.c.bf16 %v288_v46, %v286_v45  ;;  %v688_v0 = vpack.c.bf16 %v310_v63, %v309_v62  ;;  %v311_v1 = vld [vmem:[%s1240_s3 + $0x90] sm:$0xff]  ;;  %v316_v9 = vld [vmem:[%s1240_s3 + $0xb8] sm:$0xff] }
  0x2a   : > { %628 = vmatprep.subr.bf16.mxu0 %v627_v51  ;;  %677 = vmatpush1.bf16.msra.mxu1 %v676_v20  ;;  %v287_v51 = vld [vmem:[%s1238_s1 + $0x1d0] sm:$0xff]  ;;  %v691_v3 = vpack.c.bf16 %v312_v2, %v311_v1  ;;  %v325_v13 = vsub.s32 0, %v324_v12 }
  0x2b   : > { %678 = vmatprep.subr.bf16.mxu1 %v813_v7  ;;  %v657_v54 = vpack.c.bf16 %v287_v51, %v285_v50  ;;  %v315_v8 = vld [vmem:[%s1240_s3 + $0xb0] sm:$0xff] }
  0x2c   : > { %v697_v10 = vpack.c.bf16 %v316_v9, %v315_v8 }
  0x2d   : > { %630 = vmatpush1.bf16.msra.mxu0 %v629_v59  ;;  %v317_v59 = vld [vmem:[%s978_s14] sm:$0xff] }
  0x2e   : > { %632 = vmatprep.subr.bf16.mxu0 %v631_v60  ;;  %680 = vmatpush1.bf16.msra.mxu1 %v679_v29  ;;  %v320_v60 = vld [vmem:[%s978_s14 + $0x18] sm:$0xff]  ;;  %v589_v29 = vld [vmem:[%s1241_s4] ss:$0 sm:$0xff]  ;;  %s598_s14 = sshll.u32 %s868_s22, 8  ;;  %s814_s22 = smov [#allocation2]  }
  0x2f   : > { %681 = vmatprep.subr.bf16.mxu1 %v813_v7  ;;  %s1194_s9 = scalar_lea.hbm %s1242_s5, %s598_s14  ;;  %s753_s16 = sshll.u32 %s814_s22, 4  ;;  %s754_s16 = int_to_ptr.vmem [resolvable:$false] %s753_s16 }
  0x30   : > { %s755_s17 = scalar_lea.vmem %s754_s16, 512  ;;  %p756_p0 = scmp.lt.s32.totalorder %s1189_s10, %s754_s16 }
  0x31   : > { %634 = vmatpush1.bf16.msra.mxu0 %v633_v4  ;;  %v313_v4 = vld [vmem:[%s1240_s3 + $0xa0] sm:$0xff]  ;;  %p757_p1 = scmp.lt.s32.totalorder %s755_s17, %s749_s15 }
  0x32   : > { %636 = vmatprep.subr.bf16.mxu0 %v635_v5  ;;  %683 = vmatpush1.bf16.msra.mxu1 %v682_v38  ;;  %v314_v5 = vld [vmem:[%s1240_s3 + $0xa8] sm:$0xff] }
  0x33   : > { %684 = vmatprep.subr.bf16.mxu1 %v813_v7  ;;  %v694_v6 = vpack.c.bf16 %v314_v5, %v313_v4  ;;  %p758_p2 = por %p757_p1, %p756_p0 }
  0x35   : > { %638 = vmatpush1.bf16.msra.mxu0 %v637_v14  ;;  %v321_v14 = vld [vmem:[%s1239_s2] sm:$0x3]  ;;  %p759_p3 = pnand %p758_p2, %p752_p13 }
  0x36   : > { %640 = vmatprep.subr.bf16.mxu0 %v639_v15  ;;  %686 = vmatpush1.bf16.msra.mxu1 %v685_v47  ;;  %v329_v15 = vsub.s32 1, %v324_v12  ;;  %v326_v16 = vrot.slane %v321_v14, %v325_v13 }
  0x37   : > { %687 = vmatprep.subr.bf16.mxu1 %v813_v7 }
  0x38   : > { %v330_v17 = vrot.slane %v321_v14, %v329_v15 }
  0x39   : > { %642 = vmatpush1.bf16.msra.mxu0 %v641_v23 }
  0x3a   : > { %644 = vmatprep.subr.bf16.mxu0 %v643_v24  ;;  %689 = vmatpush1.bf16.msra.mxu1 %v688_v0 }
  0x3b   : > { %690 = vmatprep.subr.bf16.mxu1 %v813_v7 }
  0x3d   : > { %646 = vmatpush1.bf16.msra.mxu0 %v645_v32 }
  0x3e   : > { %648 = vmatprep.subr.bf16.mxu0 %v647_v33  ;;  %692 = vmatpush1.bf16.msra.mxu1 %v691_v3 }
  0x3f   : > { %693 = vmatprep.subr.bf16.mxu1 %v813_v7 }
  0x41   : > { %650 = vmatpush1.bf16.msra.mxu0 %v649_v41 }
  0x42   : > { %652 = vmatprep.subr.bf16.mxu0 %v651_v42  ;;  %695 = vmatpush1.bf16.msra.mxu1 %v694_v6 }
  0x43   : > { %696 = vmatprep.subr.bf16.mxu1 %v813_v7 }
  0x45   : > { %654 = vmatpush1.bf16.msra.mxu0 %v653_v48 }
  0x46   : > { %656 = vmatprep.subr.bf16.mxu0 %v655_v49  ;;  %698 = vmatpush1.bf16.msra.mxu1 %v697_v10 }
  0x49   : > { %658 = vmatpush1.bf16.msra.mxu0 %v657_v54 }
  0x4a   : > { %660 = vmatprep.subr.bf16.mxu0 %v659_v55 }
  0x4d   : > { %662 = vmatpush1.bf16.msra.mxu0 %v661_v58 }
  0x50   : > { %398 = vmatmul.mubr.f32.vlgmr.msra.gmra.mrb[0].mxu0 %v317_v59 }
  0x51   : > { %403 = vmatprep.mubr.f32.mxu0 %v320_v60 }
  0x54   : > { %404 = vmatmul.mubr.f32.gmra.mrb[2].mxu0 %v319_v61 }
 0x123   : > { %v399_v18 = vpop.f32.mrb[0].mxu0 }
 0x124   : > { %v400_v19 = vadd.f32 %v399_v18, %v326_v16  ;;  %v401_v20 = vpop.f32.mrb[1].mxu0 }
 0x125   : > { %v402_v21 = vadd.f32 %v401_v20, %v330_v17 }
 0x127   : > { %741 = vtanh.f32 %v402_v21  ;;  %v405_v22 = vpop.f32.mrb[2].mxu0 }
 0x128   : > { %743 = vtanh.f32 %v400_v19  ;;  %v406_v7 = vadd.f32 %v405_v22, %v326_v16  ;;  %v407_v23 = vpop.f32.mrb[3].mxu0 }
 0x129   : > { %v408_v24 = vadd.f32 %v407_v23, %v330_v17 }
 0x12b   : > { %745 = vtanh.f32 %v408_v24 }
 0x12c   : > { %747 = vtanh.f32 %v406_v7 }
 0x131   : > { %v742_v25 = vpop.eup %741 }
 0x132   : > { %v744_v26 = vpop.eup %743  ;;  %590 = vmatprep.mubr.msk.f32.mxu1 %vm421_vm0, %v742_v25 }
 0x133   : > { %493 = vmatmul.mubr.f32.vlgmr.msra.gmra.mrb[0].mxu1 %v744_v26 }
 0x135   : > { %v746_v27 = vpop.eup %745 }
 0x136   : > { %v748_v28 = vpop.eup %747  ;;  %591 = vmatprep.mubr.msk.f32.mxu1 %vm421_vm0, %v746_v27 }
 0x137   : > { %498 = vmatmul.mubr.f32.gmra.mrb[2].mxu1 %v748_v28 }
 0x206   : > { %v494_v30 = vpop.f32.mrb[0].mxu1 }
 0x207   : > { %v495_v31 = vadd.f32 %v589_v29, %v494_v30  ;;  %v496_v32 = vpop.f32.mrb[1].mxu1 }
 0x209   : > { %503 = vst [vmem:[%s220_s8] sm:$0xff] %v495_v31 }
 0x20a   : > { %v499_v33 = vpop.f32.mrb[2].mxu1 }
 0x20b   : > { %v500_v34 = vadd.f32 %v589_v29, %v499_v33  ;;  %v501_v35 = vpop.f32.mrb[3].mxu1 }
 0x20d   : > { %504 = vst [vmem:[%s220_s8 + $0x8] sm:$0xff] %v500_v34 }
 0x20e   : > { %762 = shalt.err (!%p759_p3)
}
 0x20f   : > { %s763_s23 = scalar_lea.hbm %s1194_s9, 256  ;;  %s767_s25 = scalar_lea.hbm %s1242_s5, 512 }
 0x210   : > { %p764_p4 = scmp.ne.s32.totalorder %s1194_s9, %s763_s23  ;;  %p768_p9 = scmp.lt.u32.totalorder %s1194_s9, %s1242_s5 }
 0x211   : > { %p769_p10 = scmp.lt.u32.totalorder %s767_s25, %s763_s23  ;;  %p771_p12 = scmp.lt.u32.totalorder %s763_s23, %s1194_s9 }
 0x212   : > { %p765_p7 = pnand %p764_p4, %p885_p5 }
 0x213   : > { %p770_p11 = por %p769_p10, %p768_p9 }
 0x214   : > { %p766_p8 = pneg %p765_p7 }
 0x215   : > { %p772_p13 = por %p771_p12, %p770_p11 }
 0x217   : > { %p773_p0 = pnand %p772_p13, %p766_p8 }
 0x219   : > { %776 = shalt.err (!%p773_p0)
}
 0x21a   : > { %s815_s8 = smov 128   ;;  %s816_s14 = smov 8  }
 0x21b   : > { %699 = dma.vmem_to_hbm [thread:$0]  (%p885_p5), %s1189_s10, 256, %s1194_s9, %s1196_s13, %s815_s8, %s815_s8, %s816_s14  }
 0x21c PF: > { %p705_p1 = scmp.ge.s32.totalorder %s811_s21, 2  ;;  %s534_s11 = sand.u32 1, %s799_s18  }
 0x21d   : > { %s535_s12 = scalar_lea.sflag [#allocation3], %s534_s11 }
 0x21e   : > { %p702_p2 = pnand %p705_p1, %p889_p6 }
 0x220   : > { %794 = dma.done.wait (!%p702_p2), %s535_s12, 256  }
 0x221   : > { %796 = vsyncadd (!%p702_p2), %s535_s12, 4294967040  ;;  %p15_p3 = scmp.ge.s32.totalorder %s872_s24, 4   ;;  %s1245_s18 = smov %s803_s19 }
 0x222   : > { %s1246_s19 = smov %s807_s20  ;;  %s1247_s20 = smov %s883_s27 }
 0x223   : > { %s1248_s21 = smov %s872_s24  ;;  %17 = sbr.rel (!%p15_p3) target bundleno = 3 (0x3), region = 75 }
 0x22a   :  { %540 = vsyncpa [#allocation3], 1 }
 0x22b   :  { %542 = vsyncpa [#allocation3 + $0x1], 1 }

// kernel: tpu_custom_call.1
= control target key start
LH: loop header
LB: loop body
LE: loop exit
PB: predicated region body
PF: predicated region fallthrough
CT: control target
= control target key end

     0   :  { %10 = vsyncpa [#allocation3], 0  ;;  %s1237_s0 = inlined_call_operand.vmem [shape: f32[32,256], index: 0, kind: input, shape index: {}]   ;;  %s1238_s1 = inlined_call_operand.vmem [shape: f32[256,192], index: 1, kind: input, shape index: {}]   ;;  %s1239_s2 = inlined_call_operand.vmem [shape: f32[1,192], index: 2, kind: input, shape index: {}]   ;;  %s1240_s3 = inlined_call_operand.vmem [shape: f32[192,128], index: 3, kind: input, shape index: {}]   ;;  %s1241_s4 = inlined_call_operand.vmem [shape: f32[1,128], index: 4, kind: input, shape index: {}]   ;;  %s1242_s5 = inlined_call_operand.hbm [shape: f32[32,128], index: 5, kind: output, shape index: {}]  }
   0x1   :  { %12 = vsyncpa [#allocation3 + $0x1], 0  ;;  %s847_s18 = smov 0   ;;  %s849_s19 = smov 0  }
   0x2   :  { %s851_s20 = smov 0   ;;  %s853_s21 = smov 0  }
   0x3 LB: > { %s868_s22 = sadd.s32 4294967295, %s811_s21   ;;  %s581_s23 = sadd.s32 4294967294, %s811_s21   ;;  %s811_s21 = sphi %s853_s21, %s1248_s21   ;;  %s807_s20 = sphi %s851_s20, %s1247_s20   ;;  %s803_s19 = sphi %s849_s19, %s1246_s19   ;;  %s799_s18 = sphi %s847_s18, %s1245_s18  }
   0x4   : > { %s872_s24 = sadd.s32 1, %s811_s21   ;;  %s135_s25 = sadd.s32 1, %s807_s20 }
   0x5   : > { %s132_s26 = ssub.s32 %s811_s21, %s872_s24  ;;  %p145_p0 = scmp.ne.s32.totalorder %s807_s20, %s803_s19 }
   0x6   : > { %p133_p1 = scmp.eq.s32.totalorder %s132_s26, 0  ;;  %p146_p2 = scmp.eq.s32.totalorder %s868_s22, 1 }
   0x7   : > { %p151_p3 = scmp.ne.s32.totalorder %s803_s19, %s799_s18  ;;  %p152_p4 = scmp.eq.s32.totalorder %s581_s23, 1 }
   0x8   : > { %s883_s27 = scalar_select %p133_p1, %s807_s20, %s135_s25  }
   0x9   : > { %p885_p5 = por %p146_p2, %p145_p0  ;;  %p889_p6 = por %p152_p4, %p151_p3 }
   0xa   : > { %p584_p7 = scmp.ge.s32.totalorder %s811_s21, 1  ;;  %p192_p8 = scmp.lt.s32.totalorder %s811_s21, 3 }
   0xc   : > { %p193_p9 = pnand %p584_p7, %p192_p8 }
   0xd   : > { %v230_v0 = vld [vmem:[%s1238_s1 + $0x8] sm:$0xff] (!%p193_p9)  ;;  %v232_v1 = vld [vmem:[%s1238_s1 + $0x18] sm:$0xff] (!%p193_p9)  ;;  %v229_v2 = vld [vmem:[%s1238_s1] sm:$0xff] (!%p193_p9)  ;;  %v813_v7 = vmov (!%p193_p9), 0.0|0.0   ;;  %s586_s9 = sshll.u32 (!%p193_p9), %s868_s22, 1  ;;  %vm421_vm0 = vcmask (!%p193_p9), 523264  }
   0xe   : > { %196 = sbr.rel (%p193_p9) target bundleno = 540 (0x21c), region = 40  ;;  %v599_v3 = vpack.c.bf16 (!%p193_p9), %v232_v1, %v230_v0  ;;  %v231_v4 = vld [vmem:[%s1238_s1 + $0x10] sm:$0xff] (!%p193_p9)  ;;  %v234_v5 = vld [vmem:[%s1238_s1 + $0x28] sm:$0xff] (!%p193_p9)  ;;  %v236_v6 = vld [vmem:[%s1238_s1 + $0x38] sm:$0xff] (!%p193_p9)  ;;  %663 = vmatprep.subr.bf16.mxu1 (!%p193_p9), %v813_v7  ;;  %p222_p10 = scmp.lt.s32.totalorder (!%p193_p9), %s586_s9, 3 }
   0xf   : > { %v601_v8 = vpack.c.bf16 (!%p193_p9), %v231_v4, %v229_v2  ;;  %v603_v9 = vpack.c.bf16 (!%p193_p9), %v236_v6, %v234_v5  ;;  %v233_v10 = vld [vmem:[%s1238_s1 + $0x20] sm:$0xff] (!%p193_p9)  ;;  %v235_v11 = vld [vmem:[%s1238_s1 + $0x30] sm:$0xff] (!%p193_p9)  ;;  %v238_v12 = vld [vmem:[%s1238_s1 + $0x48] sm:$0xff] (!%p193_p9)  ;;  %s218_s30 = sand.u32 (!%p193_p9), 1, %s803_s19  }
  0x10   : > { %600 = vmatprep.subr.bf16.mxu0 (!%p193_p9), %v599_v3  ;;  %v240_v13 = vld [vmem:[%s1238_s1 + $0x58] sm:$0xff] (!%p193_p9)  ;;  %v605_v14 = vpack.c.bf16 (!%p193_p9), %v235_v11, %v233_v10  ;;  %v237_v16 = vld [vmem:[%s1238_s1 + $0x40] sm:$0xff] (!%p193_p9)  ;;  %v239_v17 = vld [vmem:[%s1238_s1 + $0x50] sm:$0xff] (!%p193_p9)  ;;  %s1196_s13 = scalar_lea.sflag (!%p193_p9), [#allocation3], %s218_s30 }
  0x11   : > { %602 = vmatpush1.bf16.msra.mxu0 (!%p193_p9), %v601_v8  ;;  %v607_v15 = vpack.c.bf16 (!%p193_p9), %v240_v13, %v238_v12  ;;  %v242_v18 = vld [vmem:[%s1238_s1 + $0x68] sm:$0xff] (!%p193_p9)  ;;  %v244_v19 = vld [vmem:[%s1238_s1 + $0x78] sm:$0xff] (!%p193_p9)  ;;  %v609_v20 = vpack.c.bf16 (!%p193_p9), %v239_v17, %v237_v16  ;;  %v241_v22 = vld [vmem:[%s1238_s1 + $0x60] sm:$0xff] (!%p193_p9) }
  0x12   : > { %604 = vmatprep.subr.bf16.mxu0 (!%p193_p9), %v603_v9  ;;  %v611_v21 = vpack.c.bf16 (!%p193_p9), %v244_v19, %v242_v18  ;;  %v243_v23 = vld [vmem:[%s1238_s1 + $0x70] sm:$0xff] (!%p193_p9)  ;;  %v246_v24 = vld [vmem:[%s1238_s1 + $0x88] sm:$0xff] (!%p193_p9)  ;;  %v248_v25 = vld [vmem:[%s1238_s1 + $0x98] sm:$0xff] (!%p193_p9) }
  0x13   : > { %v613_v26 = vpack.c.bf16 (!%p193_p9), %v243_v23, %v241_v22  ;;  %v615_v27 = vpack.c.bf16 (!%p193_p9), %v248_v25, %v246_v24  ;;  %v245_v28 = vld [vmem:[%s1238_s1 + $0x80] sm:$0xff] (!%p193_p9)  ;;  %v247_v29 = vld [vmem:[%s1238_s1 + $0x90] sm:$0xff] (!%p193_p9)  ;;  %v250_v30 = vld [vmem:[%s1238_s1 + $0xa8] sm:$0xff] (!%p193_p9) }
  0x14   : > { %v252_v31 = vld [vmem:[%s1238_s1 + $0xb8] sm:$0xff] (!%p193_p9)  ;;  %v617_v32 = vpack.c.bf16 (!%p193_p9), %v247_v29, %v245_v28  ;;  %v249_v34 = vld [vmem:[%s1238_s1 + $0xa0] sm:$0xff] (!%p193_p9)  ;;  %v251_v35 = vld [vmem:[%s1238_s1 + $0xb0] sm:$0xff] (!%p193_p9) }
  0x15   : > { %606 = vmatpush1.bf16.msra.mxu0 %v605_v14  ;;  %s1250_s9 = smov (!%p222_p10, %s586_s9), 3  ;;  %v619_v33 = vpack.c.bf16 %v252_v31, %v250_v30  ;;  %v254_v36 = vld [vmem:[%s1238_s1 + $0xc8] sm:$0xff]  ;;  %v256_v37 = vld [vmem:[%s1238_s1 + $0xd8] sm:$0xff]  ;;  %v621_v38 = vpack.c.bf16 %v251_v35, %v249_v34  ;;  %v253_v40 = vld [vmem:[%s1238_s1 + $0xc0] sm:$0xff] }
  0x16   : > { %608 = vmatprep.subr.bf16.mxu0 %v607_v15  ;;  %s597_s25 = sshll.u32 %s1250_s9, 4  ;;  %v623_v39 = vpack.c.bf16 %v256_v37, %v254_v36  ;;  %v255_v41 = vld [vmem:[%s1238_s1 + $0xd0] sm:$0xff]  ;;  %v258_v43 = vld [vmem:[%s1238_s1 + $0xe8] sm:$0xff]  ;;  %v260_v44 = vld [vmem:[%s1238_s1 + $0xf8] sm:$0xff] }
  0x17   : > { %s978_s14 = scalar_lea.vmem %s1237_s0, %s597_s25  ;;  %v293_v45 = vld [vmem:[%s1240_s3] sm:$0xff]  ;;  %v294_v46 = vld [vmem:[%s1240_s3 + $0x8] sm:$0xff]  ;;  %v295_v47 = vld [vmem:[%s1240_s3 + $0x10] sm:$0xff]  ;;  %v625_v49 = vpack.c.bf16 %v255_v41, %v253_v40  ;;  %v627_v51 = vpack.c.bf16 %v260_v44, %v258_v43  ;;  %s585_s25 = sshll.u32 %s218_s30, 4 }
  0x18   : > { %v318_v42 = vld [vmem:[%s978_s14 + $0x8] sm:$0xff]  ;;  %v296_v48 = vld [vmem:[%s1240_s3 + $0x18] sm:$0xff]  ;;  %v664_v50 = vpack.c.bf16 %v294_v46, %v293_v45  ;;  %v257_v52 = vld [vmem:[%s1238_s1 + $0xe0] sm:$0xff]  ;;  %s220_s8 = scalar_lea.vmem [#allocation2], %s585_s25 }
  0x19   : > { %610 = vmatpush1.bf16.msra.mxu0 %v609_v20  ;;  %397 = vmatprep.mubr.f32.mxu0 %v318_v42  ;;  %v259_v53 = vld [vmem:[%s1238_s1 + $0xf0] sm:$0xff]  ;;  %v262_v54 = vld [vmem:[%s1238_s1 + $0x108] sm:$0xff]  ;;  %v264_v55 = vld [vmem:[%s1238_s1 + $0x118] sm:$0xff]  ;;  %v667_v56 = vpack.c.bf16 %v296_v48, %v295_v47  ;;  %s519_s10 = sshll.u32 %s220_s8, 4  ;;  %s1189_s10 = int_to_ptr.vmem [resolvable:$true] %s519_s10 }
  0x1a   : > { %612 = vmatprep.subr.bf16.mxu0 %v611_v21  ;;  %665 = vmatpush1.bf16.msra.mxu1 %v664_v50  ;;  %v297_v57 = vld [vmem:[%s1240_s3 + $0x20] sm:$0xff]  ;;  %v298_v58 = vld [vmem:[%s1240_s3 + $0x28] sm:$0xff]  ;;  %v629_v59 = vpack.c.bf16 %v259_v53, %v257_v52  ;;  %v631_v60 = vpack.c.bf16 %v264_v55, %v262_v54  ;;  %v263_v62 = vld [vmem:[%s1238_s1 + $0x110] sm:$0xff]  ;;  %s749_s15 = scalar_lea.vmem %s1189_s10, 256 }
  0x1b   : > { %666 = vmatprep.subr.bf16.mxu1 %v813_v7  ;;  %v261_v61 = vld [vmem:[%s1238_s1 + $0x100] sm:$0xff]  ;;  %v266_v63 = vld [vmem:[%s1238_s1 + $0x128] sm:$0xff]  ;;  %v268_v0 = vld [vmem:[%s1238_s1 + $0x138] sm:$0xff]  ;;  %v670_v1 = vpack.c.bf16 %v298_v58, %v297_v57  ;;  %p750_p11 = scmp.ne.s32.totalorder %s1189_s10, %s749_s15 }
  0x1c   : > { %v299_v2 = vld [vmem:[%s1240_s3 + $0x30] sm:$0xff]  ;;  %v300_v3 = vld [vmem:[%s1240_s3 + $0x38] sm:$0xff]  ;;  %v633_v4 = vpack.c.bf16 %v263_v62, %v261_v61  ;;  %v635_v5 = vpack.c.bf16 %v268_v0, %v266_v63  ;;  %v265_v6 = vld [vmem:[%s1238_s1 + $0x120] sm:$0xff] }
  0x1d   : > { %614 = vmatpush1.bf16.msra.mxu0 %v613_v26  ;;  %v267_v8 = vld [vmem:[%s1238_s1 + $0x130] sm:$0xff]  ;;  %v270_v9 = vld [vmem:[%s1238_s1 + $0x148] sm:$0xff]  ;;  %v272_v10 = vld [vmem:[%s1238_s1 + $0x158] sm:$0xff]  ;;  %v673_v11 = vpack.c.bf16 %v300_v3, %v299_v2  ;;  %p751_p12 = pnand %p750_p11, %p885_p5 }
  0x1e   : > { %616 = vmatprep.subr.bf16.mxu0 %v615_v27  ;;  %668 = vmatpush1.bf16.msra.mxu1 %v667_v56  ;;  %v301_v12 = vld [vmem:[%s1240_s3 + $0x40] sm:$0xff]  ;;  %v302_v13 = vld [vmem:[%s1240_s3 + $0x48] sm:$0xff]  ;;  %v637_v14 = vpack.c.bf16 %v267_v8, %v265_v6  ;;  %v639_v15 = vpack.c.bf16 %v272_v10, %v270_v9  ;;  %v271_v17 = vld [vmem:[%s1238_s1 + $0x150] sm:$0xff] }
  0x1f   : > { %669 = vmatprep.subr.bf16.mxu1 %v813_v7  ;;  %v269_v16 = vld [vmem:[%s1238_s1 + $0x140] sm:$0xff]  ;;  %v274_v18 = vld [vmem:[%s1238_s1 + $0x168] sm:$0xff]  ;;  %v276_v19 = vld [vmem:[%s1238_s1 + $0x178] sm:$0xff]  ;;  %v676_v20 = vpack.c.bf16 %v302_v13, %v301_v12  ;;  %p752_p13 = pneg %p751_p12 }
  0x20   : > { %v303_v21 = vld [vmem:[%s1240_s3 + $0x50] sm:$0xff]  ;;  %v304_v22 = vld [vmem:[%s1240_s3 + $0x58] sm:$0xff]  ;;  %v641_v23 = vpack.c.bf16 %v271_v17, %v269_v16  ;;  %v643_v24 = vpack.c.bf16 %v276_v19, %v274_v18  ;;  %v273_v25 = vld [vmem:[%s1238_s1 + $0x160] sm:$0xff] }
  0x21   : > { %618 = vmatpush1.bf16.msra.mxu0 %v617_v32  ;;  %v275_v26 = vld [vmem:[%s1238_s1 + $0x170] sm:$0xff]  ;;  %v278_v27 = vld [vmem:[%s1238_s1 + $0x188] sm:$0xff]  ;;  %v280_v28 = vld [vmem:[%s1238_s1 + $0x198] sm:$0xff]  ;;  %v679_v29 = vpack.c.bf16 %v304_v22, %v303_v21 }
  0x22   : > { %620 = vmatprep.subr.bf16.mxu0 %v619_v33  ;;  %671 = vmatpush1.bf16.msra.mxu1 %v670_v1  ;;  %v305_v30 = vld [vmem:[%s1240_s3 + $0x60] sm:$0xff]  ;;  %v306_v31 = vld [vmem:[%s1240_s3 + $0x68] sm:$0xff]  ;;  %v645_v32 = vpack.c.bf16 %v275_v26, %v273_v25  ;;  %v647_v33 = vpack.c.bf16 %v280_v28, %v278_v27  ;;  %v279_v35 = vld [vmem:[%s1238_s1 + $0x190] sm:$0xff] }
  0x23   : > { %672 = vmatprep.subr.bf16.mxu1 %v813_v7  ;;  %v277_v34 = vld [vmem:[%s1238_s1 + $0x180] sm:$0xff]  ;;  %v282_v36 = vld [vmem:[%s1238_s1 + $0x1a8] sm:$0xff]  ;;  %v284_v37 = vld [vmem:[%s1238_s1 + $0x1b8] sm:$0xff] }
  0x24   : > { %v308_v40 = vld [vmem:[%s1240_s3 + $0x78] sm:$0xff]  ;;  %v649_v41 = vpack.c.bf16 %v279_v35, %v277_v34  ;;  %v651_v42 = vpack.c.bf16 %v284_v37, %v282_v36  ;;  %v281_v43 = vld [vmem:[%s1238_s1 + $0x1a0] sm:$0xff]  ;;  %v283_v44 = vld [vmem:[%s1238_s1 + $0x1b0] sm:$0xff] }
  0x25   : > { %622 = vmatpush1.bf16.msra.mxu0 %v621_v38  ;;  %v682_v38 = vpack.c.bf16 %v306_v31, %v305_v30  ;;  %v286_v45 = vld [vmem:[%s1238_s1 + $0x1c8] sm:$0xff]  ;;  %v288_v46 = vld [vmem:[%s1238_s1 + $0x1d8] sm:$0xff]  ;;  %v653_v48 = vpack.c.bf16 %v283_v44, %v281_v43  ;;  %v285_v50 = vld [vmem:[%s1238_s1 + $0x1c0] sm:$0xff] }
  0x26   : > { %624 = vmatprep.subr.bf16.mxu0 %v623_v39  ;;  %674 = vmatpush1.bf16.msra.mxu1 %v673_v11  ;;  %v307_v39 = vld [vmem:[%s1240_s3 + $0x70] sm:$0xff]  ;;  %v290_v52 = vld [vmem:[%s1238_s1 + $0x1e8] sm:$0xff]  ;;  %v292_v53 = vld [vmem:[%s1238_s1 + $0x1f8] sm:$0xff]  ;;  %v323_v11 = vlaneseq }
  0x27   : > { %675 = vmatprep.subr.bf16.mxu1 %v813_v7  ;;  %v685_v47 = vpack.c.bf16 %v308_v40, %v307_v39  ;;  %v659_v55 = vpack.c.bf16 %v292_v53, %v290_v52  ;;  %v289_v56 = vld [vmem:[%s1238_s1 + $0x1e0] sm:$0xff]  ;;  %v291_v57 = vld [vmem:[%s1238_s1 + $0x1f0] sm:$0xff]  ;;  %v310_v63 = vld [vmem:[%s1240_s3 + $0x88] sm:$0xff] }
  0x28   : > { %v661_v58 = vpack.c.bf16 %v291_v57, %v289_v56  ;;  %v319_v61 = vld [vmem:[%s978_s14 + $0x10] sm:$0xff]  ;;  %v309_v62 = vld [vmem:[%s1240_s3 + $0x80] sm:$0xff]  ;;  %v312_v2 = vld [vmem:[%s1240_s3 + $0x98] sm:$0xff]  ;;  %v324_v12 = vshrl.u32 %v323_v11, 7 }
  0x29   : > { %626 = vmatpush1.bf16.msra.mxu0 %v625_v49  ;;  %v655_v49 = vpack.c.bf16 %v288_v46, %v286_v45  ;;  %v688_v0 = vpack.c.bf16 %v310_v63, %v309_v62  ;;  %v311_v1 = vld [vmem:[%s1240_s3 + $0x90] sm:$0xff]  ;;  %v316_v9 = vld [vmem:[%s1240_s3 + $0xb8] sm:$0xff] }
  0x2a   : > { %628 = vmatprep.subr.bf16.mxu0 %v627_v51  ;;  %677 = vmatpush1.bf16.msra.mxu1 %v676_v20  ;;  %v287_v51 = vld [vmem:[%s1238_s1 + $0x1d0] sm:$0xff]  ;;  %v691_v3 = vpack.c.bf16 %v312_v2, %v311_v1  ;;  %v325_v13 = vsub.s32 0, %v324_v12 }
  0x2b   : > { %678 = vmatprep.subr.bf16.mxu1 %v813_v7  ;;  %v657_v54 = vpack.c.bf16 %v287_v51, %v285_v50  ;;  %v315_v8 = vld [vmem:[%s1240_s3 + $0xb0] sm:$0xff] }
  0x2c   : > { %v697_v10 = vpack.c.bf16 %v316_v9, %v315_v8 }
  0x2d   : > { %630 = vmatpush1.bf16.msra.mxu0 %v629_v59  ;;  %v317_v59 = vld [vmem:[%s978_s14] sm:$0xff] }
  0x2e   : > { %632 = vmatprep.subr.bf16.mxu0 %v631_v60  ;;  %680 = vmatpush1.bf16.msra.mxu1 %v679_v29  ;;  %v320_v60 = vld [vmem:[%s978_s14 + $0x18] sm:$0xff]  ;;  %v589_v29 = vld [vmem:[%s1241_s4] ss:$0 sm:$0xff]  ;;  %s598_s14 = sshll.u32 %s868_s22, 8  ;;  %s814_s22 = smov [#allocation2]  }
  0x2f   : > { %681 = vmatprep.subr.bf16.mxu1 %v813_v7  ;;  %s1194_s9 = scalar_lea.hbm %s1242_s5, %s598_s14  ;;  %s753_s16 = sshll.u32 %s814_s22, 4  ;;  %s754_s16 = int_to_ptr.vmem [resolvable:$false] %s753_s16 }
  0x30   : > { %s755_s17 = scalar_lea.vmem %s754_s16, 512  ;;  %p756_p0 = scmp.lt.s32.totalorder %s1189_s10, %s754_s16 }
  0x31   : > { %634 = vmatpush1.bf16.msra.mxu0 %v633_v4  ;;  %v313_v4 = vld [vmem:[%s1240_s3 + $0xa0] sm:$0xff]  ;;  %p757_p1 = scmp.lt.s32.totalorder %s755_s17, %s749_s15 }
  0x32   : > { %636 = vmatprep.subr.bf16.mxu0 %v635_v5  ;;  %683 = vmatpush1.bf16.msra.mxu1 %v682_v38  ;;  %v314_v5 = vld [vmem:[%s1240_s3 + $0xa8] sm:$0xff] }
  0x33   : > { %684 = vmatprep.subr.bf16.mxu1 %v813_v7  ;;  %v694_v6 = vpack.c.bf16 %v314_v5, %v313_v4  ;;  %p758_p2 = por %p757_p1, %p756_p0 }
  0x35   : > { %638 = vmatpush1.bf16.msra.mxu0 %v637_v14  ;;  %v321_v14 = vld [vmem:[%s1239_s2] sm:$0x3]  ;;  %p759_p3 = pnand %p758_p2, %p752_p13 }
  0x36   : > { %640 = vmatprep.subr.bf16.mxu0 %v639_v15  ;;  %686 = vmatpush1.bf16.msra.mxu1 %v685_v47  ;;  %v329_v15 = vsub.s32 1, %v324_v12  ;;  %v326_v16 = vrot.slane %v321_v14, %v325_v13 }
  0x37   : > { %687 = vmatprep.subr.bf16.mxu1 %v813_v7 }
  0x38   : > { %v330_v17 = vrot.slane %v321_v14, %v329_v15 }
  0x39   : > { %642 = vmatpush1.bf16.msra.mxu0 %v641_v23 }
  0x3a   : > { %644 = vmatprep.subr.bf16.mxu0 %v643_v24  ;;  %689 = vmatpush1.bf16.msra.mxu1 %v688_v0 }
  0x3b   : > { %690 = vmatprep.subr.bf16.mxu1 %v813_v7 }
  0x3d   : > { %646 = vmatpush1.bf16.msra.mxu0 %v645_v32 }
  0x3e   : > { %648 = vmatprep.subr.bf16.mxu0 %v647_v33  ;;  %692 = vmatpush1.bf16.msra.mxu1 %v691_v3 }
  0x3f   : > { %693 = vmatprep.subr.bf16.mxu1 %v813_v7 }
  0x41   : > { %650 = vmatpush1.bf16.msra.mxu0 %v649_v41 }
  0x42   : > { %652 = vmatprep.subr.bf16.mxu0 %v651_v42  ;;  %695 = vmatpush1.bf16.msra.mxu1 %v694_v6 }
  0x43   : > { %696 = vmatprep.subr.bf16.mxu1 %v813_v7 }
  0x45   : > { %654 = vmatpush1.bf16.msra.mxu0 %v653_v48 }
  0x46   : > { %656 = vmatprep.subr.bf16.mxu0 %v655_v49  ;;  %698 = vmatpush1.bf16.msra.mxu1 %v697_v10 }
  0x49   : > { %658 = vmatpush1.bf16.msra.mxu0 %v657_v54 }
  0x4a   : > { %660 = vmatprep.subr.bf16.mxu0 %v659_v55 }
  0x4d   : > { %662 = vmatpush1.bf16.msra.mxu0 %v661_v58 }
  0x50   : > { %398 = vmatmul.mubr.f32.vlgmr.msra.gmra.mrb[0].mxu0 %v317_v59 }
  0x51   : > { %403 = vmatprep.mubr.f32.mxu0 %v320_v60 }
  0x54   : > { %404 = vmatmul.mubr.f32.gmra.mrb[2].mxu0 %v319_v61 }
 0x123   : > { %v399_v18 = vpop.f32.mrb[0].mxu0 }
 0x124   : > { %v400_v19 = vadd.f32 %v399_v18, %v326_v16  ;;  %v401_v20 = vpop.f32.mrb[1].mxu0 }
 0x125   : > { %v402_v21 = vadd.f32 %v401_v20, %v330_v17 }
 0x127   : > { %741 = vtanh.f32 %v402_v21  ;;  %v405_v22 = vpop.f32.mrb[2].mxu0 }
 0x128   : > { %743 = vtanh.f32 %v400_v19  ;;  %v406_v7 = vadd.f32 %v405_v22, %v326_v16  ;;  %v407_v23 = vpop.f32.mrb[3].mxu0 }
 0x129   : > { %v408_v24 = vadd.f32 %v407_v23, %v330_v17 }
 0x12b   : > { %745 = vtanh.f32 %v408_v24 }
 0x12c   : > { %747 = vtanh.f32 %v406_v7 }
 0x131   : > { %v742_v25 = vpop.eup %741 }
 0x132   : > { %v744_v26 = vpop.eup %743  ;;  %590 = vmatprep.mubr.msk.f32.mxu1 %vm421_vm0, %v742_v25 }
 0x133   : > { %493 = vmatmul.mubr.f32.vlgmr.msra.gmra.mrb[0].mxu1 %v744_v26 }
 0x135   : > { %v746_v27 = vpop.eup %745 }
 0x136   : > { %v748_v28 = vpop.eup %747  ;;  %591 = vmatprep.mubr.msk.f32.mxu1 %vm421_vm0, %v746_v27 }
 0x137   : > { %498 = vmatmul.mubr.f32.gmra.mrb[2].mxu1 %v748_v28 }
 0x206   : > { %v494_v30 = vpop.f32.mrb[0].mxu1 }
 0x207   : > { %v495_v31 = vadd.f32 %v589_v29, %v494_v30  ;;  %v496_v32 = vpop.f32.mrb[1].mxu1 }
 0x209   : > { %503 = vst [vmem:[%s220_s8] sm:$0xff] %v495_v31 }
 0x20a   : > { %v499_v33 = vpop.f32.mrb[2].mxu1 }
 0x20b   : > { %v500_v34 = vadd.f32 %v589_v29, %v499_v33  ;;  %v501_v35 = vpop.f32.mrb[3].mxu1 }
 0x20d   : > { %504 = vst [vmem:[%s220_s8 + $0x8] sm:$0xff] %v500_v34 }
 0x20e   : > { %762 = shalt.err (!%p759_p3)
}
 0x20f   : > { %s763_s23 = scalar_lea.hbm %s1194_s9, 256  ;;  %s767_s25 = scalar_lea.hbm %s1242_s5, 512 }
 0x210   : > { %p764_p4 = scmp.ne.s32.totalorder %s1194_s9, %s763_s23  ;;  %p768_p9 = scmp.lt.u32.totalorder %s1194_s9, %s1242_s5 }
 0x211   : > { %p769_p10 = scmp.lt.u32.totalorder %s767_s25, %s763_s23  ;;  %p771_p12 = scmp.lt.u32.totalorder %s763_s23, %s1194_s9 }
 0x212   : > { %p765_p7 = pnand %p764_p4, %p885_p5 }
 0x213   : > { %p770_p11 = por %p769_p10, %p768_p9 }
 0x214   : > { %p766_p8 = pneg %p765_p7 }
 0x215   : > { %p772_p13 = por %p771_p12, %p770_p11 }
 0x217   : > { %p773_p0 = pnand %p772_p13, %p766_p8 }
 0x219   : > { %776 = shalt.err (!%p773_p0)
}
 0x21a   : > { %s815_s8 = smov 128   ;;  %s816_s14 = smov 8  }
 0x21b   : > { %699 = dma.vmem_to_hbm [thread:$0]  (%p885_p5), %s1189_s10, 256, %s1194_s9, %s1196_s13, %s815_s8, %s815_s8, %s816_s14  }
 0x21c PF: > { %p705_p1 = scmp.ge.s32.totalorder %s811_s21, 2  ;;  %s534_s11 = sand.u32 1, %s799_s18  }
 0x21d   : > { %s535_s12 = scalar_lea.sflag [#allocation3], %s534_s11 }
 0x21e   : > { %p702_p2 = pnand %p705_p1, %p889_p6 }
 0x220   : > { %794 = dma.done.wait (!%p702_p2), %s535_s12, 256  }
 0x221   : > { %796 = vsyncadd (!%p702_p2), %s535_s12, 4294967040  ;;  %p15_p3 = scmp.ge.s32.totalorder %s872_s24, 4   ;;  %s1245_s18 = smov %s803_s19 }
 0x222   : > { %s1246_s19 = smov %s807_s20  ;;  %s1247_s20 = smov %s883_s27 }
 0x223   : > { %s1248_s21 = smov %s872_s24  ;;  %17 = sbr.rel (!%p15_p3) target bundleno = 3 (0x3), region = 75 }
 0x22a   :  { %540 = vsyncpa [#allocation3], 1 }
 0x22b   :  { %542 = vsyncpa [#allocation3 + $0x1], 1 }

</bundles_post_ra>
